<compile_context>
chip_gen: v6e
topology: v6e:2x2x1
jax: 0.10.0
libtpu: 0.0.40
codegen_flags: <defaults>
</compile_context>

<pallas_src>
import jax
import jax.numpy as jnp
from jax.experimental import pallas as pl
from jax.experimental.pallas import tpu as pltpu


def _round_up(x, mult):
    return ((x + mult - 1) // mult) * mult


def _make_kernel(resident_vt: bool, tn: int):
    """Builds the per-tile kernel body.

    Refs:
      u_ref  : (tm, r)            frozen-left tile (frozen dtype)
      a_ref  : (r, r)             A = diag(S) + X @ Y   (f32, hoisted)
      vt_ref : (r, tn) streamed   OR (r, n) VMEM-resident (frozen dtype)
      o_ref  : (tm, tn)           output tile (out dtype)
      us_ref : (tm, r)            persistent scratch: U_tile @ A, cast once.
    """

    def kernel(u_ref, a_ref, vt_ref, o_ref, us_ref):
        # Row-tile-invariant stage, once per i-tile.
        # NOTE: correctness relies on j being the innermost, NON-megacore
        # sharded ("arbitrary") grid axis so j == 0 runs first for every i.
        @pl.when(pl.program_id(1) == 0)
        def _():
            us = jnp.dot(
                u_ref[...].astype(jnp.float32),
                a_ref[...],
                preferred_element_type=jnp.float32,
            )
            # Cast once here (not per (i, j)); on the bf16 path the S+XY
            # correction therefore feeds the main matmul in bf16.
            us_ref[...] = us.astype(us_ref.dtype)

        if resident_vt:
            start = pl.multiple_of(pl.program_id(1) * tn, 128)
            vt = vt_ref[:, pl.ds(start, tn)]
        else:
            vt = vt_ref[...]

        # Dominant (tm, r) @ (r, tn) MXU matmul, f32 accumulate.
        o_ref[...] = jnp.dot(
            us_ref[...], vt, preferred_element_type=jnp.float32
        ).astype(o_ref.dtype)

    return kernel


def svd_lora_forward(
    U,
    S,
    X,
    Y,
    Vt,
    *,
    frozen_dtype=jnp.bfloat16,   # bandwidth-lean default; f32 = high precision
    out_dtype=jnp.float32,       # bf16 allowed (halves output writeback)
    tm=512,
    tn=1024,
    min_pallas_elems=128 * 128,
):
    """out = U @ (diag(S) + X @ Y) @ Vt via a tiled Pallas TPU kernel."""
    m, r_svd = U.shape
    r_chk, n = Vt.shape
    assert r_chk == r_svd and X.shape[0] == r_svd and Y.shape[1] == r_svd

    # Tiny LoRA core hoisted to plain JAX: A = diag(S) + X @ Y   (r x r, f32).
    A = jnp.diag(S.astype(jnp.float32)) + (
        X.astype(jnp.float32) @ Y.astype(jnp.float32)
    )

    # Frozen factors in reduced storage dtype.  Best practice: pre-cast once
    # at layer init so these are no-ops per forward (no extra HBM pass).
    u_c = U if U.dtype == frozen_dtype else U.astype(frozen_dtype)
    vt_c = Vt if Vt.dtype == frozen_dtype else Vt.astype(frozen_dtype)

    # Tiny problems: pallas_call launch + DMA setup dominates; let XLA fuse.
    if m * n < min_pallas_elems:
        out = (u_c.astype(jnp.float32) @ A) @ vt_c.astype(jnp.float32)
        return out.astype(out_dtype)

    itemsize = jnp.dtype(frozen_dtype).itemsize
    out_itemsize = jnp.dtype(out_dtype).itemsize
    sub = 8 if itemsize >= 4 else (16 if itemsize == 2 else 32)

    # Lane-dense output tiles: tn multiple of 128, tm sublane-aligned.
    tm_eff = min(_round_up(tm, sub), _round_up(m, sub))
    tn_eff = min(_round_up(tn, 128), _round_up(n, 128))

    # No input padding / output slicing: cdiv grid, Pallas masks the partial
    # last tiles.  r_svd (the contraction dim) is never tiled, so OOB garbage
    # in padded rows/cols of U / Vt cannot reach valid output elements.
    grid = (pl.cdiv(m, tm_eff), pl.cdiv(n, tn_eff))

    # Device VMEM capacity (clamp below physical -- v7x has only 64 MiB).
    try:
        vmem_cap = int(pltpu.get_tpu_info().vmem_capacity_bytes)
    except Exception:
        vmem_cap = 64 << 20

    # Keep the whole Vt VMEM-resident (one HBM fetch instead of one pass per
    # i-tile) when it comfortably fits; requires tn_eff | n so the in-kernel
    # dynamic slice never reads out of bounds.
    vt_resident_bytes = 2 * r_svd * n * itemsize  # conservatively double-buffered
    resident_vt = (n % tn_eff == 0) and (vt_resident_bytes <= vmem_cap // 4)

    if resident_vt:
        vt_spec = pl.BlockSpec((r_svd, n), lambda i, j: (0, 0))
        vt_bytes = vt_resident_bytes
    else:
        vt_spec = pl.BlockSpec((r_svd, tn_eff), lambda i, j: (0, j))
        vt_bytes = 2 * r_svd * tn_eff * itemsize

    est = (
        2 * tm_eff * r_svd * itemsize           # U tiles (double-buffered)
        + vt_bytes                              # Vt tiles / resident copy
        + 2 * tm_eff * tn_eff * out_itemsize    # output tiles (double-buffered)
        + 2 * r_svd * r_svd * 4                 # A
        + tm_eff * r_svd * itemsize             # US scratch
        + (4 << 20)                             # headroom
    )
    vmem_limit = int(min(max(est, 32 << 20), (vmem_cap * 3) // 4))

    kernel = _make_kernel(resident_vt, tn_eff)

    out = pl.pallas_call(
        kernel,
        out_shape=jax.ShapeDtypeStruct((m, n), out_dtype),
        grid_spec=pltpu.PrefetchScalarGridSpec(
            num_scalar_prefetch=0,
            grid=grid,
            in_specs=[
                pl.BlockSpec((tm_eff, r_svd), lambda i, j: (i, 0)),   # U row tile
                pl.BlockSpec((r_svd, r_svd), lambda i, j: (0, 0)),    # A
                vt_spec,                                              # Vt
            ],
            out_specs=pl.BlockSpec((tm_eff, tn_eff), lambda i, j: (i, j)),
            scratch_shapes=[pltpu.VMEM((tm_eff, r_svd), frozen_dtype)],
        ),
        compiler_params=pltpu.CompilerParams(
            # j MUST stay "arbitrary" (innermost, not megacore-sharded):
            # us_ref is only (re)initialized at j == 0.
            dimension_semantics=("parallel", "arbitrary"),
            vmem_limit_bytes=vmem_limit,
        ),
    )(u_c, A, vt_c)

    return out


if __name__ == "__main__":
    key = jax.random.PRNGKey(0)
    k_w1, k_x1, k_y1, k_w2, k_x2, k_y2 = jax.random.split(key, 6)

    def make_params(k_w, k_x, k_y, m, n, r_svd, r_lora):
        # Setup glue (== torch.linalg.svd + 0.01-scaled LoRA init), plain JAX.
        W = jax.random.normal(k_w, (m, n), dtype=jnp.float32)
        Ufull, Sfull, Vtfull = jnp.linalg.svd(W, full_matrices=False)
        U = Ufull[:, :r_svd]          # (m, r_svd)
        S = Sfull[:r_svd]             # (r_svd,)
        Vt = Vtfull[:r_svd, :]        # (r_svd, n)  == V.t() in the torch code
        X = jax.random.normal(k_x, (r_svd, r_lora), jnp.float32) * 0.01
        Y = jax.random.normal(k_y, (r_lora, r_svd), jnp.float32) * 0.01
        return U, S, X, Y, Vt

    # ---- case 1: aligned shapes, f32 frozen factors (high-precision path) --
    m, n, r_svd, r_lora = 256, 256, 64, 16
    U, S, X, Y, Vt = make_params(k_w1, k_x1, k_y1, m, n, r_svd, r_lora)
    with jax.default_matmul_precision("highest"):
        ref = U @ (jnp.diag(S) + X @ Y) @ Vt

    out_f32 = jax.block_until_ready(
        svd_lora_forward(U, S, X, Y, Vt,
                         frozen_dtype=jnp.float32, out_dtype=jnp.float32)
    )
    assert out_f32.shape == (m, n) and out_f32.dtype == jnp.float32
    assert jnp.allclose(out_f32, ref, atol=2e-2, rtol=2e-2)

    # ---- case 2: default bandwidth-lean path (bf16 frozen, bf16 output) ----
    # Frozen factors pre-cast once ("layer init"), so no per-call cast pass.
    U_bf16, Vt_bf16 = U.astype(jnp.bfloat16), Vt.astype(jnp.bfloat16)
    out_bf16 = jax.block_until_ready(
        svd_lora_forward(U_bf16, S, X, Y, Vt_bf16, out_dtype=jnp.bfloat16)
    )
    assert out_bf16.shape == (m, n) and out_bf16.dtype == jnp.bfloat16
    assert jnp.allclose(out_bf16.astype(jnp.float32), ref, atol=1.5e-1, rtol=1e-1)

    # ---- case 3: non-tile-aligned shapes (partial tiles, no pad/slice) -----
    m2, n2, r2, rl2 = 200, 320, 48, 8
    U2, S2, X2, Y2, Vt2 = make_params(k_w2, k_x2, k_y2, m2, n2, r2, rl2)
    with jax.default_matmul_precision("highest"):
        ref2 = U2 @ (jnp.diag(S2) + X2 @ Y2) @ Vt2
    out2 = jax.block_until_ready(svd_lora_forward(U2, S2, X2, Y2, Vt2))
    assert out2.shape == (m2, n2) and out2.dtype == jnp.float32
    assert jnp.allclose(out2, ref2, atol=1.5e-1, rtol=1e-1)

    print("KERNEL_OK")
</pallas_src>

<mosaic_0001>
module attributes {stable_mosaic.version = 11 : i64} {
  func.func @kernel(%arg0: i32, %arg1: i32, %arg2: memref<256x64xf32, #tpu.memory_space<vmem>>, %arg3: memref<64x64xf32, #tpu.memory_space<vmem>>, %arg4: memref<64x256xf32, #tpu.memory_space<vmem>>, %arg5: memref<256x256xf32, #tpu.memory_space<vmem>>, %arg6: memref<256x64xf32, #tpu.memory_space<vmem>>) attributes {dimension_semantics = [#tpu.dimension_semantics<parallel>, #tpu.dimension_semantics<arbitrary>], iteration_bounds = array<i64: 1, 1>, scalar_prefetch = 0 : i64, scratch_operands = 1 : i64, tpu.core_type = #tpu.core_type<tc>, window_params = [{transform_indices = @transform_0, window_bounds = array<i64: 256, 64>}, {pipeline_mode = #tpu.pipeline_mode<synchronous>, transform_indices = @transform_1, window_bounds = array<i64: 64, 64>}, {pipeline_mode = #tpu.pipeline_mode<synchronous>, transform_indices = @transform_2, window_bounds = array<i64: 64, 256>}, {transform_indices = @transform_3, window_bounds = array<i64: 256, 256>}]} {
    %c0_i32 = arith.constant 0 : i32
    %0 = arith.cmpi eq, %arg1, %c0_i32 : i32
    %1 = arith.extui %0 : i1 to i32
    %c0_i32_0 = arith.constant 0 : i32
    %2 = arith.cmpi ne, %1, %c0_i32_0 : i32
    scf.if %2 {
      %c0_5 = arith.constant 0 : index
      %c0_6 = arith.constant 0 : index
      %10 = vector.load %arg2[%c0_5, %c0_6] : memref<256x64xf32, #tpu.memory_space<vmem>>, vector<256x64xf32>
      %c0_7 = arith.constant 0 : index
      %c0_8 = arith.constant 0 : index
      %11 = vector.load %arg3[%c0_7, %c0_8] : memref<64x64xf32, #tpu.memory_space<vmem>>, vector<64x64xf32>
      %cst_9 = arith.constant dense<0.000000e+00> : vector<256x64xf32>
      %12 = tpu.matmul %10, %11, %cst_9 {dimension_numbers = #tpu.dot_dimension_numbers<[1], [0], [0], [1], [0, 0, 1, 1], [], []>} : vector<256x64xf32>, vector<64x64xf32>, vector<256x64xf32> -> vector<256x64xf32>
      %c0_10 = arith.constant 0 : index
      %c0_11 = arith.constant 0 : index
      %13 = vector.load %arg6[%c0_10, %c0_11] : memref<256x64xf32, #tpu.memory_space<vmem>>, vector<256x64xf32>
      tpu.vector_store %arg6[%c0_10, %c0_11], %12 {strides = array<i32>} : memref<256x64xf32, #tpu.memory_space<vmem>>, vector<256x64xf32>,
    } else {
    }
    %c256_i32 = arith.constant 256 : i32
    %3 = arith.muli %arg1, %c256_i32 : i32
    %4 = tpu.assume_multiple %3, 128 : i32
    %c0 = arith.constant 0 : index
    %5 = arith.index_cast %4 : i32 to index
    %6 = vector.load %arg4[%c0, %5] : memref<64x256xf32, #tpu.memory_space<vmem>>, vector<64x256xf32>
    %c0_1 = arith.constant 0 : index
    %c0_2 = arith.constant 0 : index
    %7 = vector.load %arg6[%c0_1, %c0_2] : memref<256x64xf32, #tpu.memory_space<vmem>>, vector<256x64xf32>
    %cst = arith.constant dense<0.000000e+00> : vector<256x256xf32>
    %8 = tpu.matmul %7, %6, %cst {dimension_numbers = #tpu.dot_dimension_numbers<[1], [0], [0], [1], [0, 0, 1, 1], [], []>} : vector<256x64xf32>, vector<64x256xf32>, vector<256x256xf32> -> vector<256x256xf32>
    %c0_3 = arith.constant 0 : index
    %c0_4 = arith.constant 0 : index
    %9 = vector.load %arg5[%c0_3, %c0_4] : memref<256x256xf32, #tpu.memory_space<vmem>>, vector<256x256xf32>
    tpu.vector_store %arg5[%c0_3, %c0_4], %8 {strides = array<i32>} : memref<256x256xf32, #tpu.memory_space<vmem>>, vector<256x256xf32>,
    return
  }
  func.func @transform_0(%arg0: i32, %arg1: i32) -> (i32, i32) {
    %c0_i32 = arith.constant 0 : i32
    %c0_i32_0 = arith.constant 0 : i32
    return %arg0, %c0_i32 : i32, i32
  }
  func.func @transform_1(%arg0: i32, %arg1: i32) -> (i32, i32) {
    %c0_i32 = arith.constant 0 : i32
    %c0_i32_0 = arith.constant 0 : i32
    %c0_i32_1 = arith.constant 0 : i32
    return %c0_i32, %c0_i32_0 : i32, i32
  }
  func.func @transform_2(%arg0: i32, %arg1: i32) -> (i32, i32) {
    %c0_i32 = arith.constant 0 : i32
    %c0_i32_0 = arith.constant 0 : i32
    %c0_i32_1 = arith.constant 0 : i32
    return %c0_i32, %c0_i32_0 : i32, i32
  }
  func.func @transform_3(%arg0: i32, %arg1: i32) -> (i32, i32) {
    %c0_i32 = arith.constant 0 : i32
    return %arg0, %arg1 : i32, i32
  }
}

</mosaic_0001>

<bundles_post_ra>
// kernel: tpu_custom_call.1
= control target key start
LH: loop header
LB: loop body
LE: loop exit
PB: predicated region body
PF: predicated region fallthrough
CT: control target
= control target key end

     0   :  { %vm59_vm0 = vcmask 523264   ;;  %s1435_s0 = inlined_call_operand.vmem [shape: f32[256,64], index: 0, kind: input, shape index: {}]   ;;  %s1436_s1 = inlined_call_operand.vmem [shape: f32[64,64], index: 1, kind: input, shape index: {}]   ;;  %s1437_s2 = inlined_call_operand.vmem [shape: f32[64,256], index: 2, kind: input, shape index: {}]   ;;  %s1438_s3 = inlined_call_operand.hbm [shape: f32[256,256], index: 3, kind: output, shape index: {}]  }
   0x1   :  { %v58_v0 = vld [vmem:[%s1436_s1 + $0x38] sm:$0xff]  ;;  %v57_v1 = vld [vmem:[%s1436_s1 + $0x30] sm:$0xff]  ;;  %v56_v2 = vld [vmem:[%s1436_s1 + $0x28] sm:$0xff] }
   0x2   :  { %1006 = vmatprep.subr.mxu0 %v58_v0  ;;  %v19_v3 = vld [vmem:[%s1435_s0] sm:$0xff]  ;;  %v54_v5 = vld [vmem:[%s1436_s1 + $0x18] sm:$0xff]  ;;  %v53_v6 = vld [vmem:[%s1436_s1 + $0x10] sm:$0xff] }
   0x3   :  { %1007 = vmatpush3.msra.mxu0 %v58_v0  ;;  %1022 = vmatprep.mubr.msk.f32.mxu0 %vm59_vm0, %v19_v3  ;;  %v55_v4 = vld [vmem:[%s1436_s1 + $0x20] sm:$0xff]  ;;  %v52_v7 = vld [vmem:[%s1436_s1 + $0x8] sm:$0xff]  ;;  %v433_v9 = vld [vmem:[%s1437_s2 + $0x78] sm:$0xff] }
   0x4   :  { %1008 = vmatprep.subr.mxu0 %v57_v1  ;;  %v51_v8 = vld [vmem:[%s1436_s1] sm:$0xff]  ;;  %v20_v10 = vld [vmem:[%s1435_s0 + $0x8] sm:$0xff]  ;;  %v432_v11 = vld [vmem:[%s1437_s2 + $0x70] sm:$0xff]  ;;  %1070 = vmatprep.subr.mxu1 %v433_v9 }
   0x5   :  { %1009 = vmatpush3.msra.mxu0 %v57_v1  ;;  %v21_v12 = vld [vmem:[%s1435_s0 + $0x10] sm:$0xff]  ;;  %v431_v13 = vld [vmem:[%s1437_s2 + $0x68] sm:$0xff]  ;;  %1078 = vmatpush1.msra.mxu1 %v432_v11 }
   0x6   :  { %1010 = vmatprep.subr.mxu0 %v56_v2 }
   0x7   :  { %1011 = vmatpush3.msra.mxu0 %v56_v2 }
   0x8   :  { %1012 = vmatprep.subr.mxu0 %v55_v4 }
   0x9   :  { %1013 = vmatpush3.msra.mxu0 %v55_v4 }
   0xa   :  { %1014 = vmatprep.subr.mxu0 %v54_v5 }
   0xb   :  { %1015 = vmatpush3.msra.mxu0 %v54_v5 }
   0xc   :  { %1016 = vmatprep.subr.mxu0 %v53_v6 }
   0xd   :  { %1017 = vmatpush3.msra.mxu0 %v53_v6 }
   0xe   :  { %1018 = vmatprep.subr.mxu0 %v52_v7 }
   0xf   :  { %1019 = vmatpush3.msra.mxu0 %v52_v7 }
  0x10   :  { %1020 = vmatprep.subr.mxu0 %v51_v8 }
  0x11   :  { %8 = vsyncpa [#allocation4], 0  ;;  %1021 = vmatpush3.msra.mxu0 %v51_v8  ;;  %1071 = vmatprep.subr.mxu1 %v431_v13  ;;  %v430_v14 = vld [vmem:[%s1437_s2 + $0x60] sm:$0xff]  ;;  %v22_v15 = vld [vmem:[%s1435_s0 + $0x18] sm:$0xff]  ;;  %v1112_v56 = vmov 0.0  }
  0x12   :  { %1023 = vmatmul.mubr.msk.f32.vlgmr.msra.gmra.mxu0 %vm59_vm0, %v20_v10  ;;  %579 = vmatprep.subr.mxu0 %v433_v9  ;;  %v429_v16 = vld [vmem:[%s1437_s2 + $0x58] sm:$0xff]  ;;  %v23_v17 = vld [vmem:[%s1435_s0 + $0x20] sm:$0xff]  ;;  %v24_v18 = vld [vmem:[%s1435_s0 + $0x28] sm:$0xff] }
  0x13   :  { %1025 = vmatprep.mubr.msk.f32.mxu0 %vm59_vm0, %v21_v12  ;;  %580 = vmatpush1.msra.mxu0 %v432_v11  ;;  %v25_v19 = vld [vmem:[%s1435_s0 + $0x30] sm:$0xff]  ;;  %v26_v20 = vld [vmem:[%s1435_s0 + $0x38] sm:$0xff]  ;;  %v27_v21 = vld [vmem:[%s1435_s0 + $0x40] sm:$0xff] }
  0x14   :  { %581 = vmatprep.subr.mxu0 %v431_v13  ;;  %1079 = vmatpush1.msra.mxu1 %v430_v14  ;;  %v28_v22 = vld [vmem:[%s1435_s0 + $0x48] sm:$0xff]  ;;  %v29_v23 = vld [vmem:[%s1435_s0 + $0x50] sm:$0xff]  ;;  %v30_v24 = vld [vmem:[%s1435_s0 + $0x58] sm:$0xff] }
  0x15   :  { %582 = vmatpush1.msra.mxu0 %v430_v14  ;;  %1072 = vmatprep.subr.mxu1 %v429_v16  ;;  %v31_v25 = vld [vmem:[%s1435_s0 + $0x60] sm:$0xff]  ;;  %v32_v26 = vld [vmem:[%s1435_s0 + $0x68] sm:$0xff]  ;;  %v33_v27 = vld [vmem:[%s1435_s0 + $0x70] sm:$0xff] }
  0x16   :  { %1026 = vmatmul.mubr.msk.f32.gmra.mxu0 %vm59_vm0, %v22_v15  ;;  %583 = vmatprep.subr.mxu0 %v429_v16  ;;  %v34_v28 = vld [vmem:[%s1435_s0 + $0x78] sm:$0xff]  ;;  %v35_v29 = vld [vmem:[%s1435_s0 + $0x80] sm:$0xff]  ;;  %v36_v30 = vld [vmem:[%s1435_s0 + $0x88] sm:$0xff] }
  0x17   :  { %1028 = vmatprep.mubr.msk.f32.mxu0 %vm59_vm0, %v23_v17  ;;  %v37_v31 = vld [vmem:[%s1435_s0 + $0x90] sm:$0xff]  ;;  %v38_v32 = vld [vmem:[%s1435_s0 + $0x98] sm:$0xff]  ;;  %v39_v33 = vld [vmem:[%s1435_s0 + $0xa0] sm:$0xff]  ;;  %675 = vmatprep.mubr.f32.mxu1 %v1112_v56 }
  0x18   :  { %v40_v34 = vld [vmem:[%s1435_s0 + $0xa8] sm:$0xff]  ;;  %v41_v35 = vld [vmem:[%s1435_s0 + $0xb0] sm:$0xff]  ;;  %v42_v36 = vld [vmem:[%s1435_s0 + $0xb8] sm:$0xff] }
  0x19   :  { %v43_v37 = vld [vmem:[%s1435_s0 + $0xc0] sm:$0xff]  ;;  %v44_v38 = vld [vmem:[%s1435_s0 + $0xc8] sm:$0xff]  ;;  %v45_v39 = vld [vmem:[%s1435_s0 + $0xd0] sm:$0xff] }
  0x1a   :  { %1029 = vmatmul.mubr.msk.f32.gmra.mxu0 %vm59_vm0, %v24_v18  ;;  %v46_v40 = vld [vmem:[%s1435_s0 + $0xd8] sm:$0xff]  ;;  %v47_v41 = vld [vmem:[%s1435_s0 + $0xe0] sm:$0xff]  ;;  %v48_v42 = vld [vmem:[%s1435_s0 + $0xe8] sm:$0xff] }
  0x1b   :  { %1031 = vmatprep.mubr.msk.f32.mxu0 %vm59_vm0, %v25_v19  ;;  %v49_v43 = vld [vmem:[%s1435_s0 + $0xf0] sm:$0xff]  ;;  %v50_v44 = vld [vmem:[%s1435_s0 + $0xf8] sm:$0xff]  ;;  %v427_v46 = vld [vmem:[%s1437_s2 + $0x48] sm:$0xff] }
  0x1c   :  { %v428_v45 = vld [vmem:[%s1437_s2 + $0x50] sm:$0xff]  ;;  %v426_v47 = vld [vmem:[%s1437_s2 + $0x40] sm:$0xff]  ;;  %v425_v48 = vld [vmem:[%s1437_s2 + $0x38] sm:$0xff] }
  0x1d   :  { %584 = vmatpush1.msra.mxu0 %v428_v45  ;;  %1080 = vmatpush1.msra.mxu1 %v428_v45  ;;  %v424_v49 = vld [vmem:[%s1437_s2 + $0x30] sm:$0xff]  ;;  %v423_v50 = vld [vmem:[%s1437_s2 + $0x28] sm:$0xff]  ;;  %v422_v51 = vld [vmem:[%s1437_s2 + $0x20] sm:$0xff] }
  0x1e   :  { %1032 = vmatmul.mubr.msk.f32.gmra.mxu0 %vm59_vm0, %v26_v20  ;;  %585 = vmatprep.subr.mxu0 %v427_v46  ;;  %v421_v52 = vld [vmem:[%s1437_s2 + $0x18] sm:$0xff]  ;;  %v420_v53 = vld [vmem:[%s1437_s2 + $0x10] sm:$0xff]  ;;  %v419_v54 = vld [vmem:[%s1437_s2 + $0x8] sm:$0xff] }
  0x1f   :  { %1034 = vmatprep.mubr.msk.f32.mxu0 %vm59_vm0, %v27_v21  ;;  %1073 = vmatprep.subr.mxu1 %v427_v46  ;;  %v418_v55 = vld [vmem:[%s1437_s2] sm:$0xff]  ;;  %s1113_s2 = smov [#allocation3]  }
  0x20   :  { %586 = vmatpush1.msra.mxu0 %v426_v47  ;;  %1081 = vmatpush1.msra.mxu1 %v426_v47  ;;  %s889_s11 = sshll.u32 %s1113_s2, 4  ;;  %s890_s11 = int_to_ptr.vmem [resolvable:$true] %s889_s11 }
  0x21   :  { %587 = vmatprep.subr.mxu0 %v425_v48  ;;  %1074 = vmatprep.subr.mxu1 %v425_v48  ;;  %s1090_s12 = scalar_lea.vmem %s890_s11, 8192  ;;  %p1095_p1 = scmp.lt.s32.totalorder %s890_s11, %s890_s11 }
  0x22   :  { %1035 = vmatmul.mubr.msk.f32.gmra.mxu0 %vm59_vm0, %v28_v22  ;;  %1082 = vmatpush1.msra.mxu1 %v424_v49  ;;  %p1091_p0 = scmp.ne.s32.totalorder %s890_s11, %s1090_s12  ;;  %p1096_p2 = scmp.lt.s32.totalorder %s1090_s12, %s1090_s12 }
  0x23   :  { %1037 = vmatprep.mubr.msk.f32.mxu0 %vm59_vm0, %v29_v23  ;;  %588 = vmatpush1.msra.mxu0 %v424_v49 }
  0x24   :  { %589 = vmatprep.subr.mxu0 %v423_v50  ;;  %1075 = vmatprep.subr.mxu1 %v423_v50  ;;  %p1097_p3 = por %p1096_p2, %p1095_p1 }
  0x25   :  { %590 = vmatpush1.msra.mxu0 %v422_v51  ;;  %1083 = vmatpush1.msra.mxu1 %v422_v51 }
  0x26   :  { %1038 = vmatmul.mubr.msk.f32.gmra.mxu0 %vm59_vm0, %v30_v24  ;;  %591 = vmatprep.subr.mxu0 %v421_v52  ;;  %p1098_p4 = pnand %p1097_p3, %p1091_p0 }
  0x27   :  { %1040 = vmatprep.mubr.msk.f32.mxu0 %vm59_vm0, %v31_v25  ;;  %1076 = vmatprep.subr.mxu1 %v421_v52 }
  0x28   :  { %592 = vmatpush1.msra.mxu0 %v420_v53  ;;  %1084 = vmatpush1.msra.mxu1 %v420_v53 }
  0x29   :  { %593 = vmatprep.subr.mxu0 %v419_v54  ;;  %1077 = vmatprep.subr.mxu1 %v419_v54 }
  0x2a   :  { %1041 = vmatmul.mubr.msk.f32.gmra.mxu0 %vm59_vm0, %v32_v26  ;;  %1085 = vmatpush1.msra.mxu1 %v418_v55 }
  0x2b   :  { %1043 = vmatprep.mubr.msk.f32.mxu0 %vm59_vm0, %v33_v27  ;;  %594 = vmatpush1.msra.mxu0 %v418_v55 }
  0x2e   :  { %1044 = vmatmul.mubr.msk.f32.gmra.mxu0 %vm59_vm0, %v34_v28 }
  0x2f   :  { %1046 = vmatprep.mubr.msk.f32.mxu0 %vm59_vm0, %v35_v29 }
  0x32   :  { %1047 = vmatmul.mubr.msk.f32.gmra.mxu0 %vm59_vm0, %v36_v30 }
  0x33   :  { %1049 = vmatprep.mubr.msk.f32.mxu0 %vm59_vm0, %v37_v31 }
  0x36   :  { %1050 = vmatmul.mubr.msk.f32.gmra.mxu0 %vm59_vm0, %v38_v32 }
  0x37   :  { %1052 = vmatprep.mubr.msk.f32.mxu0 %vm59_vm0, %v39_v33 }
  0x3a   :  { %1053 = vmatmul.mubr.msk.f32.gmra.mxu0 %vm59_vm0, %v40_v34 }
  0x3b   :  { %1055 = vmatprep.mubr.msk.f32.mxu0 %vm59_vm0, %v41_v35 }
  0x3e   :  { %1056 = vmatmul.mubr.msk.f32.gmra.mxu0 %vm59_vm0, %v42_v36 }
  0x3f   :  { %1058 = vmatprep.mubr.msk.f32.mxu0 %vm59_vm0, %v43_v37 }
  0x42   :  { %1059 = vmatmul.mubr.msk.f32.gmra.mxu0 %vm59_vm0, %v44_v38 }
  0x43   :  { %1061 = vmatprep.mubr.msk.f32.mxu0 %vm59_vm0, %v45_v39 }
  0x46   :  { %1062 = vmatmul.mubr.msk.f32.gmra.mxu0 %vm59_vm0, %v46_v40 }
  0x47   :  { %1064 = vmatprep.mubr.msk.f32.mxu0 %vm59_vm0, %v47_v41 }
  0x4a   :  { %1065 = vmatmul.mubr.msk.f32.gmra.mxu0 %vm59_vm0, %v48_v42 }
  0x4b   :  { %1067 = vmatprep.mubr.msk.f32.mxu0 %vm59_vm0, %v49_v43 }
  0x4e   :  { %1068 = vmatmul.mubr.msk.f32.gmra.mxu0 %vm59_vm0, %v50_v44 }
  0x4f   :  { %627 = vmatprep.mubr.f32.mxu0 %v1112_v56 }
  0xd2   :  { %v1024_v57 = vpop.f32.mrf.mxu0 }
  0xd3   :  { %382 = vst.msk [vmem:[#allocation2 + $0x8] sm:$0xff] %vm59_vm0, %v1024_v57 }
  0xd4   :  { %v222_v58 = vpop.f32.mrf.mxu0 }
  0xd5   :  { %381 = vst.msk [vmem:[#allocation2] sm:$0xff] %vm59_vm0, %v222_v58 }
  0xd6   :  { %v1027_v59 = vpop.f32.mrf.mxu0 }
  0xd7   :  { %384 = vst.msk [vmem:[#allocation2 + $0x18] sm:$0xff] %vm59_vm0, %v1027_v59 }
  0xd8   :  { %v232_v60 = vpop.f32.mrf.mxu0 }
  0xd9   :  { %383 = vst.msk [vmem:[#allocation2 + $0x10] sm:$0xff] %vm59_vm0, %v232_v60 }
  0xda   :  { %v1030_v61 = vpop.f32.mrf.mxu0  ;;  %v435_v2 = vld [vmem:[#allocation2 + $0x8] sm:$0xff] }
  0xdb   :  { %386 = vst.msk [vmem:[#allocation2 + $0x28] sm:$0xff] %vm59_vm0, %v1030_v61 }
  0xdc   :  { %v242_v62 = vpop.f32.mrf.mxu0  ;;  %v434_v63 = vld [vmem:[#allocation2] sm:$0xff] }
  0xdd   :  { %385 = vst.msk [vmem:[#allocation2 + $0x20] sm:$0xff] %vm59_vm0, %v242_v62  ;;  %934 = vmatmul.mubr.msk.f32.vlgmr.msra.gmra.mxu0 %vm59_vm0, %v434_v63 }
  0xde   :  { %v1033_v0 = vpop.f32.mrf.mxu0  ;;  %633 = vmatprep.mubr.f32.mxu0 %v1112_v56  ;;  %v437_v7 = vld [vmem:[#allocation2 + $0x18] sm:$0xff] }
  0xdf   :  { %388 = vst.msk [vmem:[#allocation2 + $0x38] sm:$0xff] %vm59_vm0, %v1033_v0 }
  0xe0   :  { %v252_v1 = vpop.f32.mrf.mxu0  ;;  %v436_v5 = vld [vmem:[#allocation2 + $0x10] sm:$0xff] }
  0xe1   :  { %387 = vst.msk [vmem:[#allocation2 + $0x30] sm:$0xff] %vm59_vm0, %v252_v1  ;;  %935 = vmatmul.mubr.msk.f32.gmra.mxu0 %vm59_vm0, %v435_v2 }
  0xe2   :  { %v1036_v3 = vpop.f32.mrf.mxu0  ;;  %639 = vmatprep.mubr.f32.mxu0 %v1112_v56  ;;  %v439_v14 = vld [vmem:[#allocation2 + $0x28] sm:$0xff] }
  0xe3   :  { %390 = vst.msk [vmem:[#allocation2 + $0x48] sm:$0xff] %vm59_vm0, %v1036_v3 }
  0xe4   :  { %v262_v4 = vpop.f32.mrf.mxu0  ;;  %v438_v10 = vld [vmem:[#allocation2 + $0x20] sm:$0xff] }
  0xe5   :  { %389 = vst.msk [vmem:[#allocation2 + $0x40] sm:$0xff] %vm59_vm0, %v262_v4  ;;  %936 = vmatmul.mubr.msk.f32.gmra.mxu0 %vm59_vm0, %v436_v5 }
  0xe6   :  { %v1039_v6 = vpop.f32.mrf.mxu0  ;;  %645 = vmatprep.mubr.f32.mxu0 %v1112_v56  ;;  %v441_v22 = vld [vmem:[#allocation2 + $0x38] sm:$0xff] }
  0xe7   :  { %392 = vst.msk [vmem:[#allocation2 + $0x58] sm:$0xff] %vm59_vm0, %v1039_v6 }
  0xe8   :  { %v272_v8 = vpop.f32.mrf.mxu0  ;;  %v440_v18 = vld [vmem:[#allocation2 + $0x30] sm:$0xff] }
  0xe9   :  { %937 = vmatmul.mubr.msk.f32.gmra.mxu0 %vm59_vm0, %v437_v7  ;;  %391 = vst.msk [vmem:[#allocation2 + $0x50] sm:$0xff] %vm59_vm0, %v272_v8 }
  0xea   :  { %651 = vmatprep.mubr.f32.mxu0 %v1112_v56  ;;  %v1042_v9 = vpop.f32.mrf.mxu0  ;;  %v443_v15 = vld [vmem:[#allocation2 + $0x48] sm:$0xff] }
  0xeb   :  { %394 = vst.msk [vmem:[#allocation2 + $0x68] sm:$0xff] %vm59_vm0, %v1042_v9 }
  0xec   :  { %v442_v11 = vld [vmem:[#allocation2 + $0x40] sm:$0xff]  ;;  %v282_v12 = vpop.f32.mrf.mxu0 }
  0xed   :  { %938 = vmatmul.mubr.msk.f32.gmra.mxu0 %vm59_vm0, %v438_v10  ;;  %942 = vmatmul.mubr.msk.f32.vlgmr.msra.gmra.mxu1 %vm59_vm0, %v442_v11  ;;  %393 = vst.msk [vmem:[#allocation2 + $0x60] sm:$0xff] %vm59_vm0, %v282_v12 }
  0xee   :  { %657 = vmatprep.mubr.f32.mxu0 %v1112_v56  ;;  %681 = vmatprep.mubr.f32.mxu1 %v1112_v56  ;;  %v1045_v13 = vpop.f32.mrf.mxu0  ;;  %v445_v23 = vld [vmem:[#allocation2 + $0x58] sm:$0xff] }
  0xef   :  { %396 = vst.msk [vmem:[#allocation2 + $0x78] sm:$0xff] %vm59_vm0, %v1045_v13 }
  0xf0   :  { %v292_v16 = vpop.f32.mrf.mxu0  ;;  %v444_v19 = vld [vmem:[#allocation2 + $0x50] sm:$0xff] }
  0xf1   :  { %939 = vmatmul.mubr.msk.f32.gmra.mxu0 %vm59_vm0, %v439_v14  ;;  %943 = vmatmul.mubr.msk.f32.gmra.mxu1 %vm59_vm0, %v443_v15  ;;  %395 = vst.msk [vmem:[#allocation2 + $0x70] sm:$0xff] %vm59_vm0, %v292_v16 }
  0xf2   :  { %663 = vmatprep.mubr.f32.mxu0 %v1112_v56  ;;  %687 = vmatprep.mubr.f32.mxu1 %v1112_v56  ;;  %v1048_v17 = vpop.f32.mrf.mxu0  ;;  %v447_v29 = vld [vmem:[#allocation2 + $0x68] sm:$0xff] }
  0xf3   :  { %398 = vst.msk [vmem:[#allocation2 + $0x88] sm:$0xff] %vm59_vm0, %v1048_v17 }
  0xf4   :  { %v302_v20 = vpop.f32.mrf.mxu0  ;;  %v446_v26 = vld [vmem:[#allocation2 + $0x60] sm:$0xff] }
  0xf5   :  { %940 = vmatmul.mubr.msk.f32.gmra.mxu0 %vm59_vm0, %v440_v18  ;;  %944 = vmatmul.mubr.msk.f32.gmra.mxu1 %vm59_vm0, %v444_v19  ;;  %397 = vst.msk [vmem:[#allocation2 + $0x80] sm:$0xff] %vm59_vm0, %v302_v20 }
  0xf6   :  { %669 = vmatprep.mubr.f32.mxu0 %v1112_v56  ;;  %693 = vmatprep.mubr.f32.mxu1 %v1112_v56  ;;  %v1051_v21 = vpop.f32.mrf.mxu0  ;;  %v449_v35 = vld [vmem:[#allocation2 + $0x78] sm:$0xff] }
  0xf7   :  { %400 = vst.msk [vmem:[#allocation2 + $0x98] sm:$0xff] %vm59_vm0, %v1051_v21 }
  0xf8   :  { %v312_v24 = vpop.f32.mrf.mxu0  ;;  %v448_v32 = vld [vmem:[#allocation2 + $0x70] sm:$0xff] }
  0xf9   :  { %941 = vmatmul.mubr.msk.f32.gmra.mxu0 %vm59_vm0, %v441_v22  ;;  %945 = vmatmul.mubr.msk.f32.gmra.mxu1 %vm59_vm0, %v445_v23  ;;  %399 = vst.msk [vmem:[#allocation2 + $0x90] sm:$0xff] %vm59_vm0, %v312_v24 }
  0xfa   :  { %699 = vmatprep.mubr.f32.mxu1 %v1112_v56  ;;  %v1054_v25 = vpop.f32.mrf.mxu0  ;;  %v451_v41 = vld [vmem:[#allocation2 + $0x88] sm:$0xff] }
  0xfb   :  { %402 = vst.msk [vmem:[#allocation2 + $0xa8] sm:$0xff] %vm59_vm0, %v1054_v25 }
  0xfc   :  { %v322_v27 = vpop.f32.mrf.mxu0  ;;  %v450_v38 = vld [vmem:[#allocation2 + $0x80] sm:$0xff] }
  0xfd   :  { %946 = vmatmul.mubr.msk.f32.gmra.mxu1 %vm59_vm0, %v446_v26  ;;  %401 = vst.msk [vmem:[#allocation2 + $0xa0] sm:$0xff] %vm59_vm0, %v322_v27 }
  0xfe   :  { %705 = vmatprep.mubr.f32.mxu1 %v1112_v56  ;;  %v1057_v28 = vpop.f32.mrf.mxu0  ;;  %v453_v44 = vld [vmem:[#allocation2 + $0x98] sm:$0xff] }
  0xff   :  { %404 = vst.msk [vmem:[#allocation2 + $0xb8] sm:$0xff] %vm59_vm0, %v1057_v28 }
 0x100   :  { %v332_v30 = vpop.f32.mrf.mxu0  ;;  %v452_v43 = vld [vmem:[#allocation2 + $0x90] sm:$0xff] }
 0x101   :  { %947 = vmatmul.mubr.msk.f32.gmra.mxu1 %vm59_vm0, %v447_v29  ;;  %403 = vst.msk [vmem:[#allocation2 + $0xb0] sm:$0xff] %vm59_vm0, %v332_v30 }
 0x102   :  { %711 = vmatprep.mubr.f32.mxu1 %v1112_v56  ;;  %v1060_v31 = vpop.f32.mrf.mxu0  ;;  %v455_v46 = vld [vmem:[#allocation2 + $0xa8] sm:$0xff] }
 0x103   :  { %406 = vst.msk [vmem:[#allocation2 + $0xc8] sm:$0xff] %vm59_vm0, %v1060_v31 }
 0x104   :  { %v342_v33 = vpop.f32.mrf.mxu0  ;;  %v454_v45 = vld [vmem:[#allocation2 + $0xa0] sm:$0xff] }
 0x105   :  { %948 = vmatmul.mubr.msk.f32.gmra.mxu1 %vm59_vm0, %v448_v32  ;;  %405 = vst.msk [vmem:[#allocation2 + $0xc0] sm:$0xff] %vm59_vm0, %v342_v33 }
 0x106   :  { %717 = vmatprep.mubr.f32.mxu1 %v1112_v56  ;;  %v1063_v34 = vpop.f32.mrf.mxu0  ;;  %v457_v48 = vld [vmem:[#allocation2 + $0xb8] sm:$0xff] }
 0x107   :  { %408 = vst.msk [vmem:[#allocation2 + $0xd8] sm:$0xff] %vm59_vm0, %v1063_v34 }
 0x108   :  { %v352_v36 = vpop.f32.mrf.mxu0  ;;  %v456_v47 = vld [vmem:[#allocation2 + $0xb0] sm:$0xff] }
 0x109   :  { %949 = vmatmul.mubr.msk.f32.gmra.mxu1 %vm59_vm0, %v449_v35  ;;  %407 = vst.msk [vmem:[#allocation2 + $0xd0] sm:$0xff] %vm59_vm0, %v352_v36 }
 0x10a   :  { %723 = vmatprep.mubr.f32.mxu1 %v1112_v56  ;;  %v1066_v37 = vpop.f32.mrf.mxu0  ;;  %v459_v50 = vld [vmem:[#allocation2 + $0xc8] sm:$0xff] }
 0x10b   :  { %410 = vst.msk [vmem:[#allocation2 + $0xe8] sm:$0xff] %vm59_vm0, %v1066_v37 }
 0x10c   :  { %v362_v39 = vpop.f32.mrf.mxu0  ;;  %v458_v49 = vld [vmem:[#allocation2 + $0xc0] sm:$0xff] }
 0x10d   :  { %950 = vmatmul.mubr.msk.f32.gmra.mxu1 %vm59_vm0, %v450_v38  ;;  %409 = vst.msk [vmem:[#allocation2 + $0xe0] sm:$0xff] %vm59_vm0, %v362_v39 }
 0x10e   :  { %729 = vmatprep.mubr.f32.mxu1 %v1112_v56  ;;  %v1069_v40 = vpop.f32.mrf.mxu0  ;;  %v461_v52 = vld [vmem:[#allocation2 + $0xd8] sm:$0xff] }
 0x10f   :  { %412 = vst.msk [vmem:[#allocation2 + $0xf8] sm:$0xff] %vm59_vm0, %v1069_v40 }
 0x110   :  { %v372_v42 = vpop.f32.mrf.mxu0  ;;  %v460_v51 = vld [vmem:[#allocation2 + $0xd0] sm:$0xff] }
 0x111   :  { %951 = vmatmul.mubr.msk.f32.gmra.mxu1 %vm59_vm0, %v451_v41  ;;  %411 = vst.msk [vmem:[#allocation2 + $0xf0] sm:$0xff] %vm59_vm0, %v372_v42 }
 0x112   :  { %735 = vmatprep.mubr.f32.mxu1 %v1112_v56  ;;  %v463_v54 = vld [vmem:[#allocation2 + $0xe8] sm:$0xff] }
 0x114   :  { %v462_v53 = vld [vmem:[#allocation2 + $0xe0] sm:$0xff] }
 0x115   :  { %952 = vmatmul.mubr.msk.f32.gmra.mxu1 %vm59_vm0, %v452_v43 }
 0x116   :  { %741 = vmatprep.mubr.f32.mxu1 %v1112_v56  ;;  %v465_v57 = vld [vmem:[#allocation2 + $0xf8] sm:$0xff] }
 0x118   :  { %v464_v55 = vld [vmem:[#allocation2 + $0xf0] sm:$0xff] }
 0x119   :  { %953 = vmatmul.mubr.msk.f32.gmra.mxu1 %vm59_vm0, %v453_v44 }
 0x11a   :  { %747 = vmatprep.mubr.f32.mxu1 %v1112_v56 }
 0x11d   :  { %954 = vmatmul.mubr.msk.f32.gmra.mxu1 %vm59_vm0, %v454_v45 }
 0x11e   :  { %753 = vmatprep.mubr.f32.mxu1 %v1112_v56 }
 0x121   :  { %955 = vmatmul.mubr.msk.f32.gmra.mxu1 %vm59_vm0, %v455_v46 }
 0x122   :  { %759 = vmatprep.mubr.f32.mxu1 %v1112_v56 }
 0x125   :  { %956 = vmatmul.mubr.msk.f32.gmra.mxu1 %vm59_vm0, %v456_v47 }
 0x126   :  { %765 = vmatprep.mubr.f32.mxu1 %v1112_v56 }
 0x129   :  { %957 = vmatmul.mubr.msk.f32.gmra.mxu1 %vm59_vm0, %v457_v48 }
 0x12a   :  { %771 = vmatprep.mubr.f32.mxu1 %v1112_v56 }
 0x12d   :  { %958 = vmatmul.mubr.msk.f32.gmra.mxu1 %vm59_vm0, %v458_v49 }
 0x12e   :  { %777 = vmatprep.mubr.f32.mxu1 %v1112_v56 }
 0x131   :  { %959 = vmatmul.mubr.msk.f32.gmra.mxu1 %vm59_vm0, %v459_v50 }
 0x132   :  { %783 = vmatprep.mubr.f32.mxu1 %v1112_v56 }
 0x135   :  { %960 = vmatmul.mubr.msk.f32.gmra.mxu1 %vm59_vm0, %v460_v51 }
 0x136   :  { %789 = vmatprep.mubr.f32.mxu1 %v1112_v56 }
 0x139   :  { %961 = vmatmul.mubr.msk.f32.gmra.mxu1 %vm59_vm0, %v461_v52 }
 0x13a   :  { %795 = vmatprep.mubr.f32.mxu1 %v1112_v56 }
 0x13d   :  { %962 = vmatmul.mubr.msk.f32.gmra.mxu1 %vm59_vm0, %v462_v53 }
 0x13e   :  { %801 = vmatprep.mubr.f32.mxu1 %v1112_v56 }
 0x141   :  { %963 = vmatmul.mubr.msk.f32.gmra.mxu1 %vm59_vm0, %v463_v54 }
 0x142   :  { %807 = vmatprep.mubr.f32.mxu1 %v1112_v56 }
 0x145   :  { %964 = vmatmul.mubr.msk.f32.gmra.mxu1 %vm59_vm0, %v464_v55 }
 0x146   :  { %813 = vmatprep.mubr.f32.mxu1 %v1112_v56 }
 0x149   :  { %965 = vmatmul.mubr.msk.f32.gmra.mxu1 %vm59_vm0, %v465_v57 }
 0x19d   :  { %v629_v58 = vpop.f32.mrf.mxu0 }
 0x19e   :  { %820 = vst [vmem:[#allocation3] sm:$0xff] %v629_v58 }
 0x19f   :  { %v631_v59 = vpop.f32.mrf.mxu0 }
 0x1a0   :  { %821 = vst [vmem:[#allocation3 + $0x8] sm:$0xff] %v631_v59 }
 0x1a1   :  { %v635_v60 = vpop.f32.mrf.mxu0 }
 0x1a2   :  { %822 = vst [vmem:[#allocation3 + $0x10] sm:$0xff] %v635_v60 }
 0x1a3   :  { %v637_v61 = vpop.f32.mrf.mxu0 }
 0x1a4   :  { %823 = vst [vmem:[#allocation3 + $0x18] sm:$0xff] %v637_v61 }
 0x1a5   :  { %v641_v62 = vpop.f32.mrf.mxu0 }
 0x1a6   :  { %824 = vst [vmem:[#allocation3 + $0x20] sm:$0xff] %v641_v62 }
 0x1a7   :  { %v643_v63 = vpop.f32.mrf.mxu0 }
 0x1a8   :  { %825 = vst [vmem:[#allocation3 + $0x28] sm:$0xff] %v643_v63 }
 0x1a9   :  { %v647_v0 = vpop.f32.mrf.mxu0 }
 0x1aa   :  { %826 = vst [vmem:[#allocation3 + $0x30] sm:$0xff] %v647_v0 }
 0x1ab   :  { %v649_v1 = vpop.f32.mrf.mxu0 }
 0x1ac   :  { %827 = vst [vmem:[#allocation3 + $0x38] sm:$0xff] %v649_v1 }
 0x1ad   :  { %v653_v56 = vpop.f32.mrf.mxu0  ;;  %v677_v2 = vpop.f32.mrf.mxu1 }
 0x1ae   :  { %828 = vst [vmem:[#allocation3 + $0x40] sm:$0xff] %v653_v56  ;;  %836 = vst [vmem:[#allocation3 + $0x80] sm:$0xff] %v677_v2 }
 0x1af   :  { %v655_v3 = vpop.f32.mrf.mxu0  ;;  %v679_v4 = vpop.f32.mrf.mxu1 }
 0x1b0   :  { %829 = vst [vmem:[#allocation3 + $0x48] sm:$0xff] %v655_v3  ;;  %837 = vst [vmem:[#allocation3 + $0x88] sm:$0xff] %v679_v4 }
 0x1b1   :  { %v659_v5 = vpop.f32.mrf.mxu0  ;;  %v683_v6 = vpop.f32.mrf.mxu1 }
 0x1b2   :  { %830 = vst [vmem:[#allocation3 + $0x50] sm:$0xff] %v659_v5  ;;  %838 = vst [vmem:[#allocation3 + $0x90] sm:$0xff] %v683_v6 }
 0x1b3   :  { %v661_v7 = vpop.f32.mrf.mxu0  ;;  %v685_v8 = vpop.f32.mrf.mxu1 }
 0x1b4   :  { %831 = vst [vmem:[#allocation3 + $0x58] sm:$0xff] %v661_v7  ;;  %839 = vst [vmem:[#allocation3 + $0x98] sm:$0xff] %v685_v8 }
 0x1b5   :  { %v665_v9 = vpop.f32.mrf.mxu0  ;;  %v689_v10 = vpop.f32.mrf.mxu1 }
 0x1b6   :  { %832 = vst [vmem:[#allocation3 + $0x60] sm:$0xff] %v665_v9  ;;  %840 = vst [vmem:[#allocation3 + $0xa0] sm:$0xff] %v689_v10 }
 0x1b7   :  { %v667_v11 = vpop.f32.mrf.mxu0  ;;  %v691_v12 = vpop.f32.mrf.mxu1 }
 0x1b8   :  { %833 = vst [vmem:[#allocation3 + $0x68] sm:$0xff] %v667_v11  ;;  %841 = vst [vmem:[#allocation3 + $0xa8] sm:$0xff] %v691_v12 }
 0x1b9   :  { %v671_v13 = vpop.f32.mrf.mxu0  ;;  %v695_v14 = vpop.f32.mrf.mxu1 }
 0x1ba   :  { %834 = vst [vmem:[#allocation3 + $0x70] sm:$0xff] %v671_v13  ;;  %842 = vst [vmem:[#allocation3 + $0xb0] sm:$0xff] %v695_v14 }
 0x1bb   :  { %v673_v15 = vpop.f32.mrf.mxu0  ;;  %v697_v16 = vpop.f32.mrf.mxu1 }
 0x1bc   :  { %835 = vst [vmem:[#allocation3 + $0x78] sm:$0xff] %v673_v15  ;;  %843 = vst [vmem:[#allocation3 + $0xb8] sm:$0xff] %v697_v16 }
 0x1bd   :  { %v701_v17 = vpop.f32.mrf.mxu1 }
 0x1be   :  { %844 = vst [vmem:[#allocation3 + $0xc0] sm:$0xff] %v701_v17 }
 0x1bf   :  { %v703_v18 = vpop.f32.mrf.mxu1 }
 0x1c0   :  { %845 = vst [vmem:[#allocation3 + $0xc8] sm:$0xff] %v703_v18 }
 0x1c1   :  { %v707_v19 = vpop.f32.mrf.mxu1 }
 0x1c2   :  { %846 = vst [vmem:[#allocation3 + $0xd0] sm:$0xff] %v707_v19 }
 0x1c3   :  { %v709_v20 = vpop.f32.mrf.mxu1 }
 0x1c4   :  { %847 = vst [vmem:[#allocation3 + $0xd8] sm:$0xff] %v709_v20 }
 0x1c5   :  { %v713_v21 = vpop.f32.mrf.mxu1 }
 0x1c6   :  { %848 = vst [vmem:[#allocation3 + $0xe0] sm:$0xff] %v713_v21 }
 0x1c7   :  { %v715_v22 = vpop.f32.mrf.mxu1 }
 0x1c8   :  { %849 = vst [vmem:[#allocation3 + $0xe8] sm:$0xff] %v715_v22 }
 0x1c9   :  { %v719_v23 = vpop.f32.mrf.mxu1 }
 0x1ca   :  { %850 = vst [vmem:[#allocation3 + $0xf0] sm:$0xff] %v719_v23 }
 0x1cb   :  { %v721_v24 = vpop.f32.mrf.mxu1 }
 0x1cc   :  { %851 = vst [vmem:[#allocation3 + $0xf8] sm:$0xff] %v721_v24 }
 0x1cd   :  { %v725_v25 = vpop.f32.mrf.mxu1 }
 0x1ce   :  { %852 = vst [vmem:[#allocation3 + $0x100] sm:$0xff] %v725_v25 }
 0x1cf   :  { %v727_v26 = vpop.f32.mrf.mxu1 }
 0x1d0   :  { %853 = vst [vmem:[#allocation3 + $0x108] sm:$0xff] %v727_v26 }
 0x1d1   :  { %v731_v27 = vpop.f32.mrf.mxu1 }
 0x1d2   :  { %854 = vst [vmem:[#allocation3 + $0x110] sm:$0xff] %v731_v27 }
 0x1d3   :  { %v733_v28 = vpop.f32.mrf.mxu1 }
 0x1d4   :  { %855 = vst [vmem:[#allocation3 + $0x118] sm:$0xff] %v733_v28 }
 0x1d5   :  { %v737_v29 = vpop.f32.mrf.mxu1 }
 0x1d6   :  { %856 = vst [vmem:[#allocation3 + $0x120] sm:$0xff] %v737_v29 }
 0x1d7   :  { %v739_v30 = vpop.f32.mrf.mxu1 }
 0x1d8   :  { %857 = vst [vmem:[#allocation3 + $0x128] sm:$0xff] %v739_v30 }
 0x1d9   :  { %v743_v31 = vpop.f32.mrf.mxu1 }
 0x1da   :  { %858 = vst [vmem:[#allocation3 + $0x130] sm:$0xff] %v743_v31 }
 0x1db   :  { %v745_v32 = vpop.f32.mrf.mxu1 }
 0x1dc   :  { %859 = vst [vmem:[#allocation3 + $0x138] sm:$0xff] %v745_v32 }
 0x1dd   :  { %v749_v33 = vpop.f32.mrf.mxu1 }
 0x1de   :  { %860 = vst [vmem:[#allocation3 + $0x140] sm:$0xff] %v749_v33 }
 0x1df   :  { %v751_v34 = vpop.f32.mrf.mxu1 }
 0x1e0   :  { %861 = vst [vmem:[#allocation3 + $0x148] sm:$0xff] %v751_v34 }
 0x1e1   :  { %v755_v35 = vpop.f32.mrf.mxu1 }
 0x1e2   :  { %862 = vst [vmem:[#allocation3 + $0x150] sm:$0xff] %v755_v35 }
 0x1e3   :  { %v757_v36 = vpop.f32.mrf.mxu1 }
 0x1e4   :  { %863 = vst [vmem:[#allocation3 + $0x158] sm:$0xff] %v757_v36 }
 0x1e5   :  { %v761_v37 = vpop.f32.mrf.mxu1 }
 0x1e6   :  { %864 = vst [vmem:[#allocation3 + $0x160] sm:$0xff] %v761_v37 }
 0x1e7   :  { %v763_v38 = vpop.f32.mrf.mxu1 }
 0x1e8   :  { %865 = vst [vmem:[#allocation3 + $0x168] sm:$0xff] %v763_v38 }
 0x1e9   :  { %v767_v39 = vpop.f32.mrf.mxu1 }
 0x1ea   :  { %866 = vst [vmem:[#allocation3 + $0x170] sm:$0xff] %v767_v39 }
 0x1eb   :  { %v769_v40 = vpop.f32.mrf.mxu1 }
 0x1ec   :  { %867 = vst [vmem:[#allocation3 + $0x178] sm:$0xff] %v769_v40 }
 0x1ed   :  { %v773_v41 = vpop.f32.mrf.mxu1 }
 0x1ee   :  { %868 = vst [vmem:[#allocation3 + $0x180] sm:$0xff] %v773_v41 }
 0x1ef   :  { %v775_v42 = vpop.f32.mrf.mxu1 }
 0x1f0   :  { %869 = vst [vmem:[#allocation3 + $0x188] sm:$0xff] %v775_v42 }
 0x1f1   :  { %v779_v43 = vpop.f32.mrf.mxu1 }
 0x1f2   :  { %870 = vst [vmem:[#allocation3 + $0x190] sm:$0xff] %v779_v43 }
 0x1f3   :  { %v781_v44 = vpop.f32.mrf.mxu1 }
 0x1f4   :  { %871 = vst [vmem:[#allocation3 + $0x198] sm:$0xff] %v781_v44 }
 0x1f5   :  { %v785_v45 = vpop.f32.mrf.mxu1 }
 0x1f6   :  { %872 = vst [vmem:[#allocation3 + $0x1a0] sm:$0xff] %v785_v45 }
 0x1f7   :  { %v787_v46 = vpop.f32.mrf.mxu1 }
 0x1f8   :  { %873 = vst [vmem:[#allocation3 + $0x1a8] sm:$0xff] %v787_v46 }
 0x1f9   :  { %v791_v47 = vpop.f32.mrf.mxu1 }
 0x1fa   :  { %874 = vst [vmem:[#allocation3 + $0x1b0] sm:$0xff] %v791_v47 }
 0x1fb   :  { %v793_v48 = vpop.f32.mrf.mxu1 }
 0x1fc   :  { %875 = vst [vmem:[#allocation3 + $0x1b8] sm:$0xff] %v793_v48 }
 0x1fd   :  { %v797_v49 = vpop.f32.mrf.mxu1 }
 0x1fe   :  { %876 = vst [vmem:[#allocation3 + $0x1c0] sm:$0xff] %v797_v49 }
 0x1ff   :  { %v799_v50 = vpop.f32.mrf.mxu1 }
 0x200   :  { %877 = vst [vmem:[#allocation3 + $0x1c8] sm:$0xff] %v799_v50 }
 0x201   :  { %v803_v51 = vpop.f32.mrf.mxu1 }
 0x202   :  { %878 = vst [vmem:[#allocation3 + $0x1d0] sm:$0xff] %v803_v51 }
 0x203   :  { %v805_v52 = vpop.f32.mrf.mxu1 }
 0x204   :  { %879 = vst [vmem:[#allocation3 + $0x1d8] sm:$0xff] %v805_v52 }
 0x205   :  { %v809_v53 = vpop.f32.mrf.mxu1 }
 0x206   :  { %880 = vst [vmem:[#allocation3 + $0x1e0] sm:$0xff] %v809_v53 }
 0x207   :  { %v811_v54 = vpop.f32.mrf.mxu1 }
 0x208   :  { %881 = vst [vmem:[#allocation3 + $0x1e8] sm:$0xff] %v811_v54 }
 0x209   :  { %v815_v55 = vpop.f32.mrf.mxu1 }
 0x20a   :  { %882 = vst [vmem:[#allocation3 + $0x1f0] sm:$0xff] %v815_v55 }
 0x20b   :  { %v817_v57 = vpop.f32.mrf.mxu1 }
 0x20c   :  { %883 = vst [vmem:[#allocation3 + $0x1f8] sm:$0xff] %v817_v57 }
 0x20d   :  { %1101 = shalt.err (!%p1098_p4)
}
 0x20e   :  { %s1114_s13 = smov 256   ;;  %s1115_s14 = smov 16  }
 0x20f   :  { %895 = dma.vmem_to_hbm [thread:$0]  %s890_s11, 8192, %s1438_s3, [#allocation4], %s1114_s13, %s1114_s13, %s1115_s14  }
 0x210   :  { %1110 = dma.done.wait [#allocation4], 8192  }
 0x211   :  { %1111 = vsyncadd [#allocation4], 4294959104 }
 0x212   :  { %899 = vsyncpa [#allocation4], 1 }

</bundles_post_ra>
